<compile_context>
chip_gen: v5e
topology: v5e:2x2
jax: 0.10.0
libtpu: 0.0.40
codegen_flags: <defaults>
</compile_context>

<pallas_src>
from functools import partial

import jax
import jax.numpy as jnp
from jax import lax
from jax.experimental import pallas as pl
from jax.experimental.pallas import tpu as pltpu


def _attention_kernel(x_ref,     # VMEM (1, C, N)   keys/values positions (f32)
                      xq_ref,    # VMEM (1, C, TQ)  this tile's query positions (f32)
                      w_ref,     # VMEM (2C, C)     packed [folded-qk ; gamma*value] weights (mxu dtype)
                      b_ref,     # VMEM (2C, 1)     packed biases (f32)
                      o_ref,     # VMEM (1, C, TQ)
                      xm_scr,    # VMEM (C, N)      keys/values in mxu dtype (per-batch scratch)
                      v_scr,     # VMEM (C, N)      gamma-scaled value projection (per-batch scratch)
                      *, mxu_dtype):
    C = w_ref.shape[1]
    w = w_ref[...]                         # (2C, C) already mxu dtype
    b = b_ref[...]                         # (2C, 1) f32
    w_qk, w_v = w[:C], w[C:]
    b_qk, b_v = b[:C], b[C:]

    # Per-(batch, core-split) prologue: cast keys/values once and project the
    # (gamma-folded) values once; reused by every query tile (qi axis is
    # "arbitrary" so the scratch persists across it).
    @pl.when(pl.program_id(2) == 0)
    def _():
        xm = x_ref[0].astype(mxu_dtype)                                    # (C, N)
        xm_scr[...] = xm
        v = jnp.dot(w_v, xm, preferred_element_type=jnp.float32) + b_v    # (C, N) f32
        v_scr[...] = v.astype(mxu_dtype)

    x_q = xq_ref[0]                                                        # (C, TQ) f32

    # t[:, i] = (wq wk^T)^T x_i + wk bq ; query-only terms cancel in softmax.
    t = jnp.dot(w_qk, x_q.astype(mxu_dtype),
                preferred_element_type=jnp.float32) + b_qk                 # (C, TQ) f32

    # energy^T[j, i] = t_i . x_j  -- transposed orientation so the softmax
    # stats land in (1, TQ) and broadcast over C for free in the epilogue.
    energy_t = lax.dot_general(
        xm_scr[...], t.astype(mxu_dtype),
        dimension_numbers=(((0,), (0,)), ((), ())),
        preferred_element_type=jnp.float32)                                # (N, TQ)

    # Numerically-stable softmax with deferred normalization (f32 math).
    m = jnp.max(energy_t, axis=0, keepdims=True)                           # (1, TQ)
    p = jnp.exp(energy_t - m)                                              # (N, TQ)
    l = jnp.sum(p, axis=0, keepdims=True)                                  # (1, TQ)

    # out_un[c, i] = sum_j v[c, j] * p[j, i]   (== gamma * value @ attn^T * l)
    out_un = jnp.dot(v_scr[...], p.astype(mxu_dtype),
                     preferred_element_type=jnp.float32)                   # (C, TQ)

    # Exact reciprocal is essentially free: only TQ denominators.
    o_ref[0] = (out_un * pl.reciprocal(l) + x_q).astype(o_ref.dtype)


def _choose_query_tile(n, target):
    """Largest multiple-of-128 divisor of n that is <= target (lane-dense &
    BlockSpec-legal); falls back to the full extent for tiny n."""
    t = (min(target, n) // 128) * 128
    while t >= 128:
        if n % t == 0:
            return t
        t -= 128
    # TODO(synk): pad N to a multiple of 128 here instead of a full-extent tile
    # (a full-extent tile at production N materializes an (N, N)-shaped block).
    return n


def attention_block_pallas(x_nchw, wq, bq, wk, bk, wv, bv, gamma,
                           *, query_tile=256, tc_splits=None,
                           mxu_dtype=jnp.bfloat16):
    """x_nchw: (B, C, H, W) float32.  wq/wk: (C, C//8), bq/bk: (C//8,),
    wv: (C, C), bv: (C,), gamma: (1,).  Returns (B, C, H, W).
    query_tile=256 targets v6e/v7x (256x256 MXU); use 128 on v5e."""
    B, C, H, W = x_nchw.shape
    N = H * W
    tq = _choose_query_tile(N, query_tile)
    n_tiles = N // tq
    if tc_splits is None:
        tc_splits = 2 if (B == 1 and n_tiles % 2 == 0 and n_tiles >= 2) else 1
    elif tc_splits < 1 or n_tiles % tc_splits != 0:
        tc_splits = 1
    tiles_per_split = n_tiles // tc_splits

    # NCHW -> (B, C, N): pure reshape, no transpose / extra HBM pass.
    x_bcn = x_nchw.reshape(B, C, N)

    g = gamma[0]
    # Fold q/k projections: energy_equiv = X^T (wq wk^T) X + 1 (wk bq)^T X.
    # bk is dropped on purpose: query-only terms cancel in the row softmax.
    w_fold = wk @ wq.T                                         # (C, C)
    r_fold = wk @ bq                                           # (C,)
    # Fold gamma into the value projection: gamma*(V A^T) == (gamma V) A^T.
    wv_t = g * wv.T                                            # (C, C)
    bv_g = g * bv                                              # (C,)
    w_stack = jnp.concatenate([w_fold, wv_t], axis=0).astype(mxu_dtype)          # (2C, C)
    b_stack = jnp.concatenate([r_fold, bv_g], axis=0)[:, None].astype(jnp.float32)  # (2C, 1)

    itemsize = jnp.dtype(mxu_dtype).itemsize
    cost = pl.CostEstimate(
        flops=2 * B * C * N * (2 * C + 2 * N),
        transcendentals=B * N * N,
        bytes_accessed=3 * B * C * N * 4 + 2 * C * (C * itemsize + 4),
    )

    out_bcn = pl.pallas_call(
        partial(_attention_kernel, mxu_dtype=mxu_dtype),
        out_shape=jax.ShapeDtypeStruct((B, C, N), x_bcn.dtype),
        grid_spec=pltpu.PrefetchScalarGridSpec(
            num_scalar_prefetch=0,
            grid=(B, tc_splits, tiles_per_split),
            in_specs=[
                pl.BlockSpec((1, C, N), lambda b, s, q: (b, 0, 0)),          # keys/values
                pl.BlockSpec((1, C, tq),
                             lambda b, s, q: (b, 0, s * tiles_per_split + q)),  # query tile
                pl.BlockSpec((2 * C, C), lambda b, s, q: (0, 0)),            # packed weights
                pl.BlockSpec((2 * C, 1), lambda b, s, q: (0, 0)),            # packed biases
            ],
            out_specs=pl.BlockSpec(
                (1, C, tq), lambda b, s, q: (b, 0, s * tiles_per_split + q)),
            scratch_shapes=[
                pltpu.VMEM((C, N), mxu_dtype),   # keys/values in mxu dtype
                pltpu.VMEM((C, N), mxu_dtype),   # gamma-scaled value projection
            ],
        ),
        compiler_params=pltpu.CompilerParams(
            dimension_semantics=("parallel", "parallel", "arbitrary"),
            vmem_limit_bytes=48 * 1024 * 1024),
        cost_estimate=cost,
    )(x_bcn, x_bcn, w_stack, b_stack)

    # (B, C, N) -> NCHW: pure reshape.
    return out_bcn.reshape(B, C, H, W)


def attention_block_ref(x_nchw, wq, bq, wk, bk, wv, bv, gamma):
    """Plain-JAX reference mirroring the PyTorch forward exactly."""
    B, C, H, W = x_nchw.shape
    N = H * W
    x_flat = x_nchw.reshape(B, C, N)                                   # (B, C, N)
    # 1x1 conv: out[b, co, n] = sum_ci W[ci, co] * x[b, ci, n] + b[co]
    query = jnp.einsum('bcn,cd->bdn', x_flat, wq) + bq[None, :, None]  # (B, C8, N)
    key = jnp.einsum('bcn,cd->bdn', x_flat, wk) + bk[None, :, None]    # (B, C8, N)
    value = jnp.einsum('bcn,cd->bdn', x_flat, wv) + bv[None, :, None]  # (B, C, N)
    energy = jnp.einsum('bdi,bdj->bij', query, key)                    # (B, N, N)
    attention = jax.nn.softmax(energy, axis=-1)
    attn_out = jnp.einsum('bcj,bij->bci', value, attention)            # (B, C, N)
    out = gamma[0] * attn_out + x_flat
    return out.reshape(B, C, H, W)


if __name__ == "__main__":
    # Small, MXU-friendly sizes consistent with the module (channel % 8 == 0).
    B, C, H, W = 2, 32, 16, 16
    C8 = C // 8

    key = jax.random.PRNGKey(0)
    kx, kq, kbq, kk, kbk, kv, kbv = jax.random.split(key, 7)

    x = jax.random.normal(kx, (B, C, H, W), dtype=jnp.float32)

    # Shapes from the module __init__:
    #   proj_q/proj_k: Conv2d(C, C//8, 1) -> weight (C, C8), bias (C8,)
    #   proj_v:        Conv2d(C, C, 1)    -> weight (C, C),  bias (C,)
    #   gamma:         torch inits to 0; use nonzero so attention contributes.
    wq = 0.1 * jax.random.normal(kq, (C, C8), dtype=jnp.float32)
    bq = 0.1 * jax.random.normal(kbq, (C8,), dtype=jnp.float32)
    wk = 0.1 * jax.random.normal(kk, (C, C8), dtype=jnp.float32)
    bk = 0.1 * jax.random.normal(kbk, (C8,), dtype=jnp.float32)
    wv = 0.1 * jax.random.normal(kv, (C, C), dtype=jnp.float32)
    bv = 0.1 * jax.random.normal(kbv, (C,), dtype=jnp.float32)
    gamma = jnp.array([0.5], dtype=jnp.float32)

    ref = attention_block_ref(x, wq, bq, wk, bk, wv, bv, gamma)

    # 1) f32 MXU path, query_tile=128 -> 2 query tiles per batch, exercises the
    #    hoisted prologue + scratch reuse.  Tight check vs. PyTorch semantics.
    out_f32 = attention_block_pallas(x, wq, bq, wk, bk, wv, bv, gamma,
                                     query_tile=128, mxu_dtype=jnp.float32)
    out_f32 = jax.block_until_ready(out_f32)
    assert out_f32.shape == (B, C, H, W)
    assert jnp.allclose(out_f32, ref, atol=5e-3, rtol=5e-3), "f32 mismatch vs reference"

    # 2) bf16 MXU path with the default query_tile=256 (v6e/v7x config):
    #    f32 accumulation + f32 softmax keep it well within a few percent.
    out_bf16 = attention_block_pallas(x, wq, bq, wk, bk, wv, bv, gamma,
                                      mxu_dtype=jnp.bfloat16)
    out_bf16 = jax.block_until_ready(out_bf16)
    assert out_bf16.shape == (B, C, H, W)
    assert jnp.allclose(out_bf16, ref, atol=5e-2, rtol=5e-2), "bf16 mismatch vs reference"

    # 3) Batch-1 path with the auto TensorCore split (grid=(1, 2, 1)) to cover
    #    the v7x two-core layout now that the qi axis is "arbitrary".
    x1 = x[:1]
    ref1 = attention_block_ref(x1, wq, bq, wk, bk, wv, bv, gamma)
    out1 = attention_block_pallas(x1, wq, bq, wk, bk, wv, bv, gamma,
                                  query_tile=128, mxu_dtype=jnp.float32)
    out1 = jax.block_until_ready(out1)
    assert out1.shape == (1, C, H, W)
    assert jnp.allclose(out1, ref1, atol=5e-3, rtol=5e-3), "split-grid mismatch vs reference"

    print("KERNEL_OK")
</pallas_src>

<mosaic_0001>
module attributes {stable_mosaic.version = 11 : i64} {
  func.func @_attention_kernel(%arg0: i32, %arg1: i32, %arg2: i32, %arg3: memref<1x32x256xf32, #tpu.memory_space<vmem>>, %arg4: memref<1x32x128xf32, #tpu.memory_space<vmem>>, %arg5: memref<64x32xf32, #tpu.memory_space<vmem>>, %arg6: memref<64x1xf32, #tpu.memory_space<vmem>>, %arg7: memref<1x32x128xf32, #tpu.memory_space<vmem>>, %arg8: memref<32x256xf32, #tpu.memory_space<vmem>>, %arg9: memref<32x256xf32, #tpu.memory_space<vmem>>) attributes {dimension_semantics = [#tpu.dimension_semantics<parallel>, #tpu.dimension_semantics<parallel>, #tpu.dimension_semantics<arbitrary>], iteration_bounds = array<i64: 2, 1, 2>, scalar_prefetch = 0 : i64, scratch_operands = 2 : i64, tpu.core_type = #tpu.core_type<tc>, window_params = [{transform_indices = @transform_0, window_bounds = array<i64: 1, 32, 256>}, {transform_indices = @transform_1, window_bounds = array<i64: 1, 32, 128>}, {pipeline_mode = #tpu.pipeline_mode<synchronous>, transform_indices = @transform_2, window_bounds = array<i64: 64, 32>}, {pipeline_mode = #tpu.pipeline_mode<synchronous>, transform_indices = @transform_3, window_bounds = array<i64: 64, 1>}, {transform_indices = @transform_4, window_bounds = array<i64: 1, 32, 128>}]} {
    %c0 = arith.constant 0 : index
    %c0_0 = arith.constant 0 : index
    %0 = vector.load %arg5[%c0, %c0_0] : memref<64x32xf32, #tpu.memory_space<vmem>>, vector<64x32xf32>
    %c0_1 = arith.constant 0 : index
    %c0_2 = arith.constant 0 : index
    %1 = vector.load %arg6[%c0_1, %c0_2] : memref<64x1xf32, #tpu.memory_space<vmem>>, vector<64x1xf32>
    %2 = vector.extract_strided_slice %0 {offsets = [0, 0], sizes = [32, 32], strides = [1, 1]} : vector<64x32xf32> to vector<32x32xf32>
    %3 = vector.extract_strided_slice %0 {offsets = [32, 0], sizes = [32, 32], strides = [1, 1]} : vector<64x32xf32> to vector<32x32xf32>
    %4 = vector.extract_strided_slice %1 {offsets = [0, 0], sizes = [32, 1], strides = [1, 1]} : vector<64x1xf32> to vector<32x1xf32>
    %5 = vector.extract_strided_slice %1 {offsets = [32, 0], sizes = [32, 1], strides = [1, 1]} : vector<64x1xf32> to vector<32x1xf32>
    %c0_i32 = arith.constant 0 : i32
    %6 = arith.cmpi eq, %arg2, %c0_i32 : i32
    %7 = arith.extui %6 : i1 to i32
    %c0_i32_3 = arith.constant 0 : i32
    %8 = arith.cmpi ne, %7, %c0_i32_3 : i32
    scf.if %8 {
      %c0_18 = arith.constant 0 : index
      %c0_19 = arith.constant 0 : index
      %c0_20 = arith.constant 0 : index
      %32 = vector.load %arg3[%c0_18, %c0_19, %c0_20] : memref<1x32x256xf32, #tpu.memory_space<vmem>>, vector<1x32x256xf32>
      %33 = vector.shape_cast %32 : vector<1x32x256xf32> to vector<32x256xf32>
      %c0_21 = arith.constant 0 : index
      %c0_22 = arith.constant 0 : index
      %34 = vector.load %arg8[%c0_21, %c0_22] : memref<32x256xf32, #tpu.memory_space<vmem>>, vector<32x256xf32>
      tpu.vector_store %arg8[%c0_21, %c0_22], %33 {strides = array<i32>} : memref<32x256xf32, #tpu.memory_space<vmem>>, vector<32x256xf32>,
      %cst_23 = arith.constant dense<0.000000e+00> : vector<32x256xf32>
      %35 = tpu.matmul %3, %33, %cst_23 {dimension_numbers = #tpu.dot_dimension_numbers<[1], [0], [0], [1], [0, 0, 1, 1], [], []>} : vector<32x32xf32>, vector<32x256xf32>, vector<32x256xf32> -> vector<32x256xf32>
      %36 = vector.broadcast %5 : vector<32x1xf32> to vector<32x256xf32>
      %37 = arith.addf %35, %36 : vector<32x256xf32>
      %c0_24 = arith.constant 0 : index
      %c0_25 = arith.constant 0 : index
      %38 = vector.load %arg9[%c0_24, %c0_25] : memref<32x256xf32, #tpu.memory_space<vmem>>, vector<32x256xf32>
      tpu.vector_store %arg9[%c0_24, %c0_25], %37 {strides = array<i32>} : memref<32x256xf32, #tpu.memory_space<vmem>>, vector<32x256xf32>,
    } else {
    }
    %c0_4 = arith.constant 0 : index
    %c0_5 = arith.constant 0 : index
    %c0_6 = arith.constant 0 : index
    %9 = vector.load %arg4[%c0_4, %c0_5, %c0_6] : memref<1x32x128xf32, #tpu.memory_space<vmem>>, vector<1x32x128xf32>
    %10 = vector.shape_cast %9 : vector<1x32x128xf32> to vector<32x128xf32>
    %cst = arith.constant dense<0.000000e+00> : vector<32x128xf32>
    %11 = tpu.matmul %2, %10, %cst {dimension_numbers = #tpu.dot_dimension_numbers<[1], [0], [0], [1], [0, 0, 1, 1], [], []>} : vector<32x32xf32>, vector<32x128xf32>, vector<32x128xf32> -> vector<32x128xf32>
    %12 = vector.broadcast %4 : vector<32x1xf32> to vector<32x128xf32>
    %13 = arith.addf %11, %12 : vector<32x128xf32>
    %c0_7 = arith.constant 0 : index
    %c0_8 = arith.constant 0 : index
    %14 = vector.load %arg8[%c0_7, %c0_8] : memref<32x256xf32, #tpu.memory_space<vmem>>, vector<32x256xf32>
    %cst_9 = arith.constant dense<0.000000e+00> : vector<256x128xf32>
    %15 = tpu.matmul %14, %13, %cst_9 {dimension_numbers = #tpu.dot_dimension_numbers<[0], [0], [1], [1], [0, 1, 1, 1], [], []>} : vector<32x256xf32>, vector<32x128xf32>, vector<256x128xf32> -> vector<256x128xf32>
    %cst_10 = arith.constant dense<0xFF800000> : vector<128xf32>
    %16 = vector.multi_reduction <maximumf>, %15, %cst_10 [0] : vector<256x128xf32> to vector<128xf32>
    %17 = vector.shape_cast %16 : vector<128xf32> to vector<1x128xf32>
    %18 = vector.broadcast %17 : vector<1x128xf32> to vector<256x128xf32>
    %19 = arith.subf %15, %18 : vector<256x128xf32>
    %20 = math.exp %19 : vector<256x128xf32>
    %cst_11 = arith.constant dense<0.000000e+00> : vector<128xf32>
    %21 = vector.multi_reduction <add>, %20, %cst_11 [0] : vector<256x128xf32> to vector<128xf32>
    %22 = vector.shape_cast %21 : vector<128xf32> to vector<1x128xf32>
    %c0_12 = arith.constant 0 : index
    %c0_13 = arith.constant 0 : index
    %23 = vector.load %arg9[%c0_12, %c0_13] : memref<32x256xf32, #tpu.memory_space<vmem>>, vector<32x256xf32>
    %cst_14 = arith.constant dense<0.000000e+00> : vector<32x128xf32>
    %24 = tpu.matmul %23, %20, %cst_14 {dimension_numbers = #tpu.dot_dimension_numbers<[1], [0], [0], [1], [0, 0, 1, 1], [], []>} : vector<32x256xf32>, vector<256x128xf32>, vector<32x128xf32> -> vector<32x128xf32>
    %25 = tpu.reciprocal %22 : vector<1x128xf32> -> vector<1x128xf32>
    %26 = vector.broadcast %25 : vector<1x128xf32> to vector<32x128xf32>
    %27 = arith.mulf %24, %26 : vector<32x128xf32>
    %28 = arith.addf %27, %10 : vector<32x128xf32>
    %c0_15 = arith.constant 0 : index
    %c0_16 = arith.constant 0 : index
    %c0_17 = arith.constant 0 : index
    %29 = vector.load %arg7[%c0_15, %c0_16, %c0_17] : memref<1x32x128xf32, #tpu.memory_space<vmem>>, vector<1x32x128xf32>
    %30 = vector.shape_cast %29 : vector<1x32x128xf32> to vector<32x128xf32>
    %31 = vector.shape_cast %28 : vector<32x128xf32> to vector<1x32x128xf32>
    tpu.vector_store %arg7[%c0_15, %c0_16, %c0_17], %31 {strides = array<i32>} : memref<1x32x128xf32, #tpu.memory_space<vmem>>, vector<1x32x128xf32>,
    return
  }
  func.func @transform_0(%arg0: i32, %arg1: i32, %arg2: i32) -> (i32, i32, i32) {
    %c0_i32 = arith.constant 0 : i32
    %c0_i32_0 = arith.constant 0 : i32
    %c0_i32_1 = arith.constant 0 : i32
    return %arg0, %c0_i32, %c0_i32_0 : i32, i32, i32
  }
  func.func @transform_1(%arg0: i32, %arg1: i32, %arg2: i32) -> (i32, i32, i32) {
    %c2_i32 = arith.constant 2 : i32
    %0 = arith.muli %arg1, %c2_i32 : i32
    %1 = arith.addi %0, %arg2 : i32
    %c0_i32 = arith.constant 0 : i32
    %c0_i32_0 = arith.constant 0 : i32
    return %arg0, %c0_i32, %1 : i32, i32, i32
  }
  func.func @transform_2(%arg0: i32, %arg1: i32, %arg2: i32) -> (i32, i32) {
    %c0_i32 = arith.constant 0 : i32
    %c0_i32_0 = arith.constant 0 : i32
    %c0_i32_1 = arith.constant 0 : i32
    return %c0_i32, %c0_i32_0 : i32, i32
  }
  func.func @transform_3(%arg0: i32, %arg1: i32, %arg2: i32) -> (i32, i32) {
    %c0_i32 = arith.constant 0 : i32
    %c0_i32_0 = arith.constant 0 : i32
    %c0_i32_1 = arith.constant 0 : i32
    return %c0_i32, %c0_i32_0 : i32, i32
  }
  func.func @transform_4(%arg0: i32, %arg1: i32, %arg2: i32) -> (i32, i32, i32) {
    %c2_i32 = arith.constant 2 : i32
    %0 = arith.muli %arg1, %c2_i32 : i32
    %1 = arith.addi %0, %arg2 : i32
    %c0_i32 = arith.constant 0 : i32
    %c0_i32_0 = arith.constant 0 : i32
    return %arg0, %c0_i32, %1 : i32, i32, i32
  }
}

</mosaic_0001>

<bundles_post_ra>
// kernel: tpu_custom_call.1
= control target key start
LH: loop header
LB: loop body
LE: loop exit
PB: predicated region body
PF: predicated region fallthrough
CT: control target
= control target key end

     0   :  { %9 = vsyncpa [#allocation5], 0  ;;  %s2058_s0 = inlined_call_operand.vmem [shape: f32[2,32,256], index: 0, kind: input, shape index: {}]   ;;  %s2059_s1 = inlined_call_operand.hbm [shape: f32[2,32,256], index: 1, kind: input, shape index: {}]   ;;  %s2060_s2 = inlined_call_operand.vmem [shape: f32[64,32], index: 2, kind: input, shape index: {}]   ;;  %s2061_s3 = inlined_call_operand.vmem [shape: f32[64,1], index: 3, kind: input, shape index: {}]   ;;  %s2062_s4 = inlined_call_operand.hbm [shape: f32[2,32,256], index: 4, kind: output, shape index: {}]  }
   0x1   :  { %11 = vsyncpa [#allocation5 + $0x1], 0 }
   0x2   :  { %12 = vsyncpa [#allocation6], 0 }
   0x3   :  { %14 = vsyncpa [#allocation6 + $0x1], 0  ;;  %s1549_s15 = smov 0   ;;  %s1551_s16 = smov 0  }
   0x4   :  { %s1553_s17 = smov 0   ;;  %s1555_s18 = smov 0  }
   0x5   :  { %s1557_s19 = smov 0   ;;  %s1559_s20 = smov 0  }
   0x6   :  { %s1561_s21 = smov 0   ;;  %s1563_s22 = smov 0  }
   0x7 LB: > { %2066 = sst [smem:[#allocation10_spill]] %s1494_s17  ;;  %s1146_s23 = sadd.s32 4294967295, %s1514_s22   ;;  %s1514_s22 = sphi %s1563_s22, %s20_s22   ;;  %s1510_s21 = sphi %s1561_s21, %s2083_s21   ;;  %s1506_s20 = sphi %s1559_s20, %s2082_s20   ;;  %s1502_s19 = sphi %s1557_s19, %s2081_s19   ;;  %s1498_s18 = sphi %s1555_s18, %s2080_s18   ;;  %s1494_s17 = sphi %s1553_s17, %s2075_s17   ;;  %s1490_s16 = sphi %s1551_s16, %s2079_s16   ;;  %s1486_s15 = sphi %s1549_s15, %s2078_s15  }
   0x8   : > { %s1147_s24 = sadd.s32 4294967294, %s1514_s22   ;;  %s32_s25 = sadd.s32 1, %s1506_s20 }
   0x9   : > { %s39_s26 = sadd.s32 1, %s1510_s21  ;;  %p33_p0 = scmp.ge.s32.totalorder %s32_s25, 2 }
   0xa   : > { %s78_s27 = sadd.s32 1, %s1494_s17  ;;  %p85_p1 = scmp.ne.s32.totalorder %s1494_s17, %s1490_s16 }
   0xb   : > { %p86_p2 = scmp.eq.s32.totalorder %s1514_s22, 0  ;;  %s2085_s25 = smov (%p33_p0, %s32_s25), 0 }
   0xc   : > { %2067 = sst [smem:[#allocation11_spill]] %s2085_s25  ;;  %s2087_s26 = smov (!%p33_p0, %s39_s26), %s1510_s21 }
   0xd   : > { %s74_s28 = ssub.s32 %s1506_s20, %s2085_s25  ;;  %p1602_p3 = por %p86_p2, %p85_p1 }
   0xe   : > { %p41_p4 = scmp.ge.s32.totalorder %s2087_s26, 2  ;;  %p91_p5 = scmp.ne.s32.totalorder %s1490_s16, %s1486_s15 }
   0xf   : > { %p92_p6 = scmp.eq.s32.totalorder %s1146_s23, 0  ;;  %p163_p7 = scmp.eq.s32.totalorder %s1146_s23, 3 }
  0x10   : > { %s2089_s26 = smov (%p41_p4, %s2087_s26), 0  ;;  %p169_p10 = scmp.eq.s32.totalorder %s1147_s24, 3 }
  0x11   : > { %2069 = sst [smem:[#allocation12_spill]] %s2089_s26  ;;  %p1610_p8 = por %p92_p6, %p91_p5 }
  0x12   : > { %p1614_p9 = por %p163_p7, %p85_p1  ;;  %s73_s6 = ssub.s32 %s1510_s21, %s2089_s26 }
  0x13   : > { %s75_s7 = sor.u32 %s74_s28, %s73_s6  ;;  %p1620_p12 = por %p169_p10, %p91_p5 }
  0x14   : > { %p76_p11 = scmp.eq.s32.totalorder %s75_s7, 0  ;;  %p1241_p13 = scmp.lt.s32.totalorder %s1514_s22, 4 }
  0x15   : > { %s203_s9 = sand.u32 1, %s1494_s17   ;;  %s1151_s12 = sshll.u32 %s1510_s21, 3 }
  0x16   : > { %s1627_s10 = scalar_select %p76_p11, %s1494_s17, %s78_s27  }
  0x17   : > { %s1150_s11 = sshll.u32 %s203_s9, 5  ;;  %s213_s13 = sadd.s32 %s1506_s20, %s1151_s12 }
  0x18   : > { %2073 = sst [smem:[#allocation13_spill]] %s1627_s10  ;;  %s207_s14 = scalar_lea.vmem [#allocation4], %s1150_s11 }
  0x19   : > { %s218_s23 = sshll.u32 %s207_s14, 4  ;;  %s1152_s26 = sshll.u32 %s213_s13, 3  ;;  %s219_s23 = int_to_ptr.vmem [resolvable:$true] %s218_s23 }
  0x1a   : > { %s215_s6 = scalar_lea.hbm %s2059_s1, %s1152_s26  ;;  %p1234_p0 = pnand %p1241_p13, %p1602_p3 }
  0x1b   : > { %s216_s7 = sshll.u32 %s215_s6, 4  ;;  %s204_s25 = scalar_lea.sflag [#allocation5], %s203_s9  ;;  %s217_s7 = int_to_ptr.hbm [resolvable:$true] %s216_s7 }
  0x1c   : > { %s1516_s27 = smov 256   ;;  %s1517_s10 = smov 128  }
  0x1d   : > { %s1518_s17 = smov 8   ;;  %p1153_p1 = scmp.ge.s32.totalorder %s1514_s22, 1 }
  0x1e   : > { %1236 = dma.hbm_to_vmem [thread:$0]  (!%p1234_p0), %s217_s7, 512, %s219_s23, %s204_s25, %s1516_s27, %s1517_s10, %s1518_s17  }
  0x1f   : > { %p226_p2 = scmp.lt.s32.totalorder %s1514_s22, 5 }
  0x21   : > { %p227_p4 = pnand %p1153_p1, %p226_p2 }
  0x22   : > { %s1639_s11 = sand.u32 (!%p227_p4), 1, %s1490_s16  }
  0x23   : > { %230 = sbr.rel (%p227_p4) target bundleno = 916 (0x394), region = 36  ;;  %s1154_s26 = sshll.u32 (!%p227_p4), %s1639_s11, 5 }
  0x24   : > { %s233_s29 = scalar_lea.sflag (!%p227_p4), [#allocation5], %s1639_s11  ;;  %s1643_s12 = scalar_lea.vmem (!%p227_p4), [#allocation4], %s1154_s26 }
  0x28   : > { %1477 = dma.done.wait (%p1610_p8), %s233_s29, 512  }
  0x29   : > { %1479 = vsyncadd (%p1610_p8), %s233_s29, 4294966784  ;;  %p267_p3 = scmp.lt.s32.totalorder %s1502_s19, 1  ;;  %v1659_v0 = vld [vmem:[%s2060_s2] sm:$0xff]  ;;  %v1664_v1 = vld [vmem:[%s2060_s2 + $0x8] sm:$0xff]  ;;  %s1720_s7 = scalar_lea.vmem [#allocation7], %s1154_s26 }
  0x2a   : > { %v1669_v2 = vld [vmem:[%s2060_s2 + $0x10] sm:$0xff]  ;;  %v1674_v3 = vld [vmem:[%s2060_s2 + $0x18] sm:$0xff]  ;;  %v280_v4 = vld [vmem:[%s2060_s2 + $0x20] sm:$0xff]  ;;  %p1158_p5 = scmp.ne.s32.totalorder %s1498_s18, 0 }
  0x2b   : > { %s268_s17 = scalar_select %p267_p3, %s1502_s19, 1  ;;  %v281_v5 = vld [vmem:[%s2060_s2 + $0x28] sm:$0xff]  ;;  %v282_v6 = vld [vmem:[%s2060_s2 + $0x30] sm:$0xff]  ;;  %v283_v7 = vld [vmem:[%s2060_s2 + $0x38] sm:$0xff] }
  0x2c   : > { %v1691_v8 = vld [vmem:[%s2061_s3] sm:$0xff]  ;;  %v1696_v9 = vld [vmem:[%s2061_s3 + $0x8] sm:$0xff]  ;;  %v1701_v10 = vld [vmem:[%s2061_s3 + $0x10] sm:$0xff]  ;;  %295 = sbr.rel (%p1158_p5) target bundleno = 202 (0xca), region = 44 }
  0x2d   : > { %s1208_s25 = sshll.u32 %s268_s17, 6  ;;  %v1706_v11 = vld [vmem:[%s2061_s3 + $0x18] sm:$0xff]  ;;  %v288_v12 = vld [vmem:[%s2061_s3 + $0x20] sm:$0xff]  ;;  %v289_v13 = vld [vmem:[%s2061_s3 + $0x28] sm:$0xff] }
  0x2e   : > { %s1654_s13 = scalar_lea.vmem %s2058_s0, %s1208_s25  ;;  %v290_v14 = vld [vmem:[%s2061_s3 + $0x30] sm:$0xff]  ;;  %v291_v15 = vld [vmem:[%s2061_s3 + $0x38] sm:$0xff] }
  0x31   : > { %v302_v16 = vld [vmem:[%s1654_s13 + $0x30] sm:$0xff]  ;;  %v303_v17 = vld [vmem:[%s1654_s13 + $0x38] sm:$0xff]  ;;  %v300_v18 = vld [vmem:[%s1654_s13 + $0x20] sm:$0xff]  ;;  %vm332_vm0 = vcmask 261120   ;;  %v1519_v24 = vmov 0  }
  0x32   : > { %310 = vst [vmem:[#allocation2 + $0x28] sm:$0xff] %v302_v16  ;;  %357 = vmatpush.msra.mxu0 %v302_v16  ;;  %1209 = vmatpush.msra.mxu2 %v302_v16  ;;  %v301_v19 = vld [vmem:[%s1654_s13 + $0x28] sm:$0xff]  ;;  %v298_v20 = vld [vmem:[%s1654_s13 + $0x10] sm:$0xff]  ;;  %v299_v21 = vld [vmem:[%s1654_s13 + $0x18] sm:$0xff] }
  0x33   : > { %311 = vst [vmem:[#allocation2 + $0x38] sm:$0xff] %v303_v17  ;;  %386 = vmatpush.msra.mxu1 %v303_v17  ;;  %1213 = vmatpush.msra.mxu3 %v303_v17  ;;  %v296_v22 = vld [vmem:[%s1654_s13] sm:$0xff]  ;;  %v297_v23 = vld [vmem:[%s1654_s13 + $0x8] sm:$0xff] }
  0x34   : > { %308 = vst [vmem:[#allocation2 + $0x8] sm:$0xff] %v300_v18  ;;  %358 = vmatpush.msra.mxu0 %v300_v18  ;;  %1210 = vmatpush.msra.mxu2 %v300_v18 }
  0x35   : > { %309 = vst [vmem:[#allocation2 + $0x20] sm:$0xff] %v301_v19  ;;  %387 = vmatpush.msra.mxu1 %v301_v19  ;;  %1214 = vmatpush.msra.mxu3 %v301_v19 }
  0x36   : > { %306 = vst [vmem:[#allocation2 + $0x18] sm:$0xff] %v298_v20  ;;  %359 = vmatpush.msra.mxu0 %v298_v20  ;;  %1211 = vmatpush.msra.mxu2 %v298_v20 }
  0x37   : > { %307 = vst [vmem:[#allocation2 + $0x10] sm:$0xff] %v299_v21  ;;  %388 = vmatpush.msra.mxu1 %v299_v21  ;;  %1215 = vmatpush.msra.mxu3 %v299_v21 }
  0x38   : > { %304 = vst [vmem:[#allocation2 + $0x30] sm:$0xff] %v296_v22  ;;  %360 = vmatpush.msra.mxu0 %v296_v22  ;;  %1212 = vmatpush.msra.mxu2 %v296_v22 }
  0x39   : > { %305 = vst [vmem:[#allocation2] sm:$0xff] %v297_v23  ;;  %389 = vmatpush.msra.mxu1 %v297_v23  ;;  %1216 = vmatpush.msra.mxu3 %v297_v23 }
  0x3a   : > { %1159 = vmatmul.msk.f32.vlgmr.msra.gmra.mxu0 %vm332_vm0, %v280_v4  ;;  %1161 = vmatmul.msk.f32.vlgmr.msra.gmra.mxu2 %vm332_vm0, %v282_v6 }
  0x3b   : > { %1163 = vmatmul.msk.f32.vlgmr.msra.gmra.mxu1 %vm332_vm0, %v280_v4  ;;  %1165 = vmatmul.msk.f32.vlgmr.msra.gmra.mxu3 %vm332_vm0, %v282_v6 }
  0x3c   : > { %1317 = vset.pattern.permute.xlu1 %v1519_v24  ;;  %1316 = vset.pattern.permute.xlu0 %v1519_v24 }
  0x3d   : > { %324 = vperm.xlu1 %1317, %v290_v14   ;;  %314 = vperm.xlu0 %1316, %v288_v12  }
  0x42   : > { %1160 = vmatmul.msk.f32.gmra.mxu0 %vm332_vm0, %v281_v5  ;;  %1162 = vmatmul.msk.f32.gmra.mxu2 %vm332_vm0, %v283_v7 }
  0x43   : > { %1164 = vmatmul.msk.f32.gmra.mxu1 %vm332_vm0, %v281_v5  ;;  %1166 = vmatmul.msk.f32.gmra.mxu3 %vm332_vm0, %v283_v7 }
  0x45   : > { %329 = vperm.xlu1 %1317, %v291_v15   ;;  %319 = vperm.xlu0 %1316, %v289_v13  }
  0xaf   : > { %v315_v25 = vpop.permute.xlu0 %314  ;;  %v325_v30 = vpop.permute.xlu1 %324 }
  0xb7   : > { %v362_v26 = vpop.f32.mrf.mxu0  ;;  %v320_v34 = vpop.permute.xlu0 %319 }
  0xb8   : > { %v363_v27 = vadd.f32 %v362_v26, %v315_v25  ;;  %v391_v28 = vpop.f32.mrf.mxu1  ;;  %v330_v40 = vpop.permute.xlu1 %329 }
  0xb9   : > { %v392_v29 = vadd.f32 %v391_v28, %v315_v25 }
  0xba   : > { %403 = vst [vmem:[#allocation3] sm:$0xff] %v363_v27 }
  0xbb   : > { %404 = vst [vmem:[#allocation3 + $0x18] sm:$0xff] %v392_v29 }
  0xbd   : > { %v368_v31 = vpop.f32.mrf.mxu2 }
  0xbe   : > { %v369_v32 = vadd.f32 %v368_v31, %v325_v30  ;;  %v397_v33 = vpop.f32.mrf.mxu3 }
  0xbf   : > { %v398_v35 = vadd.f32 %v397_v33, %v325_v30  ;;  %v365_v36 = vpop.f32.mrf.mxu0 }
  0xc0   : > { %407 = vst [vmem:[#allocation3 + $0x28] sm:$0xff] %v369_v32  ;;  %v366_v37 = vadd.f32 %v365_v36, %v320_v34  ;;  %v394_v38 = vpop.f32.mrf.mxu1 }
  0xc1   : > { %408 = vst [vmem:[#allocation3 + $0x8] sm:$0xff] %v398_v35  ;;  %v395_v39 = vadd.f32 %v394_v38, %v320_v34 }
  0xc2   : > { %405 = vst [vmem:[#allocation3 + $0x10] sm:$0xff] %v366_v37 }
  0xc3   : > { %406 = vst [vmem:[#allocation3 + $0x20] sm:$0xff] %v395_v39 }
  0xc5   : > { %v371_v41 = vpop.f32.mrf.mxu2 }
  0xc6   : > { %v372_v42 = vadd.f32 %v371_v41, %v330_v40  ;;  %v400_v43 = vpop.f32.mrf.mxu3 }
  0xc7   : > { %v401_v44 = vadd.f32 %v400_v43, %v330_v40 }
  0xc8   : > { %409 = vst [vmem:[#allocation3 + $0x30] sm:$0xff] %v372_v42 }
  0xc9   : > { %410 = vst [vmem:[#allocation3 + $0x38] sm:$0xff] %v401_v44 }
  0xca PF: > { %v477_v45 = vld [vmem:[#allocation2 + $0x30] sm:$0xff]  ;;  %v1740_v46 = vld [vmem:[%s1643_s12 + $0x18] sm:$0xff]  ;;  %v1520_v47 = vmov 0   ;;  %v1748_v49 = vld [vmem:[%s1643_s12 + $0x8] sm:$0xff]  ;;  %vm435_vm1 = vcmask 261120   ;;  %s1204_s26 = sshll.u32 %s1502_s19, 3 }
  0xcb   : > { %485 = vxpose.xlu2.b32.start [1/4] (short) %v477_v45, 128  ;;  %1318 = vset.pattern.permute.xlu0 %v1520_v47  ;;  %v1743_v48 = vld [vmem:[%s1643_s12 + $0x10] sm:$0xff]  ;;  %v1753_v50 = vld [vmem:[%s1643_s12] sm:$0xff]  ;;  %v479_v51 = vld [vmem:[#allocation2 + $0x18] sm:$0xff]  ;;  %s1033_s12 = sadd.s32 %s1498_s18, %s1204_s26  ;;  %s1036_s25 = sshll.u32 %s1720_s7, 4  ;;  %s1037_s25 = int_to_ptr.vmem [resolvable:$true] %s1036_s25 }
  0xcc   : > { %460 = vmatpush.msra.mxu0 %v1740_v46  ;;  %432 = vperm.xlu0 %1318, %v1706_v11   ;;  %v481_v52 = vld [vmem:[#allocation2 + $0x8] sm:$0xff]  ;;  %v478_v54 = vld [vmem:[#allocation2] sm:$0xff]  ;;  %v480_v55 = vld [vmem:[#allocation2 + $0x10] sm:$0xff]  ;;  %s1205_s13 = sshll.u32 %s1033_s12, 3  ;;  %s1021_s18 = scalar_lea.sflag [#allocation6], %s1639_s11 }
  0xcd   : > { %1319 = vset.pattern.permute.xlu1 %v1520_v47  ;;  %v483_v53 = vld [vmem:[#allocation2 + $0x28] sm:$0xff]  ;;  %v482_v56 = vld [vmem:[#allocation2 + $0x20] sm:$0xff]  ;;  %v484_v57 = vld [vmem:[#allocation2 + $0x38] sm:$0xff]  ;;  %s1035_s17 = scalar_lea.hbm %s2062_s4, %s1205_s13  ;;  %s1436_s24 = scalar_lea.hbm %s2062_s4, 128 }
  0xce   : > { %461 = vmatpush.msra.mxu0 %v1743_v48  ;;  %422 = vperm.xlu1 %1319, %v1696_v9   ;;  %s1038_s19 = sshll.u32 %s1035_s17, 4  ;;  %s1039_s19 = int_to_ptr.hbm [resolvable:$true] %s1038_s19 }
  0xcf   : > { %s1430_s9 = sshra.s32 %s1039_s19, 4  ;;  %s1431_s9 = int_to_ptr.hbm [resolvable:$true] %s1430_s9 }
  0xd0   : > { %462 = vmatpush.msra.mxu0 %v1748_v49  ;;  %s1432_s10 = scalar_lea.hbm %s1431_s9, 32  ;;  %p1437_p10 = scmp.lt.s32.totalorder %s1431_s9, %s2062_s4 }
  0xd1   : > { %p1433_p6 = scmp.ne.s32.totalorder %s1431_s9, %s1432_s10  ;;  %p1438_p11 = scmp.lt.s32.totalorder %s1436_s24, %s1432_s10 }
  0xd2   : > { %463 = vmatpush.msra.mxu0 %v1753_v50 }
  0xd3   : > { %1167 = vmatmul.msk.f32.vlgmr.msra.gmra.mxu0 %vm435_vm1, %v1659_v0  ;;  %486 = vxpose.xlu2.b32.cont [2/4] (short) %v479_v51, 128  ;;  %p1434_p7 = pnand %p1433_p6, %p1614_p9  ;;  %p1439_p13 = por %p1438_p11, %p1437_p10 }
  0xd4   : > { %427 = vperm.xlu0 %1318, %v1701_v10  }
  0xd5   : > { %p1435_p8 = pneg %p1434_p7 }
  0xd6   : > { %417 = vperm.xlu1 %1319, %v1691_v8  }
  0xd7   : > { %p1440_p0 = pnand %p1439_p13, %p1435_p8 }
  0xdb   : > { %1168 = vmatmul.msk.f32.gmra.mxu0 %vm435_vm1, %v1664_v1  ;;  %487 = vxpose.xlu2.b32.cont [3/4] (short) %v481_v52, 128 }
  0xe3   : > { %1169 = vmatmul.msk.f32.gmra.mxu0 %vm435_vm1, %v1669_v2  ;;  %488 = vxpose.xlu2.b32.end [4/4] (short) %v483_v53, 128 }
  0xeb   : > { %1170 = vmatmul.msk.f32.gmra.mxu0 %vm435_vm1, %v1674_v3 }
  0xf6   : > { %517 = vxpose.xlu0.b32.start [1/4] (short) %v478_v54, 128 }
  0xfe   : > { %518 = vxpose.xlu0.b32.cont [2/4] (short) %v480_v55, 128 }
 0x106   : > { %519 = vxpose.xlu0.b32.cont [3/4] (short) %v482_v56, 128 }
 0x10e   : > { %520 = vxpose.xlu0.b32.end [4/4] (short) %v484_v57, 128 }
 0x13e   : > { %v433_v60 = vpop.permute.xlu0 %432 }
 0x140   : > { %v423_v62 = vpop.permute.xlu1 %422 }
 0x146   : > { %v428_v2 = vpop.permute.xlu0 %427 }
 0x148   : > { %v418_v4 = vpop.permute.xlu1 %417 }
 0x150   : > { %v465_v58 = vpop.f32.mrf.mxu0 }
 0x151   : > { %v466_v7 = vadd.f32 %v465_v58, %v418_v4 }
 0x158   : > { %v468_v59 = vpop.f32.mrf.mxu0 }
 0x159   : > { %v469_v3 = vadd.f32 %v468_v59, %v423_v62 }
 0x160   : > { %v471_v61 = vpop.f32.mrf.mxu0 }
 0x161   : > { %v472_v5 = vadd.f32 %v471_v61, %v428_v2 }
 0x164   : > { %v501_v63 = vpop.trf.xlu2 }
 0x168   : > { %v474_v0 = vpop.f32.mrf.mxu0 }
 0x169   : > { %v475_v1 = vadd.f32 %v474_v0, %v433_v60 }
 0x16b   : > { %657 = vmatpush.msrb.mxu0 %v475_v1  ;;  %1217 = vmatpush.msra.mxu1 %v475_v1 }
 0x16c   : > { %1218 = vmatpush.msra.mxu2 %v475_v1  ;;  %1219 = vmatpush.msra.mxu3 %v475_v1  ;;  %v502_v6 = vpop.trf.xlu2 }
 0x16d   : > { %658 = vmatpush.msrb.mxu0 %v472_v5  ;;  %1220 = vmatpush.msra.mxu1 %v472_v5 }
 0x16e   : > { %1221 = vmatpush.msra.mxu2 %v472_v5  ;;  %1222 = vmatpush.msra.mxu3 %v472_v5 }
 0x16f   : > { %659 = vmatpush.msrb.mxu0 %v469_v3  ;;  %1223 = vmatpush.msra.mxu1 %v469_v3 }
 0x170   : > { %1224 = vmatpush.msra.mxu2 %v469_v3  ;;  %1225 = vmatpush.msra.mxu3 %v469_v3 }
 0x171   : > { %660 = vmatpush.msrb.mxu0 %v466_v7  ;;  %1226 = vmatpush.msra.mxu1 %v466_v7 }
 0x172   : > { %1171 = vmatmul.msk.f32.vlgmr.msrb.gmra.mxu0 %vm435_vm1, %v501_v63  ;;  %1227 = vmatpush.msra.mxu2 %v466_v7 }
 0x173   : > { %1228 = vmatpush.msra.mxu3 %v466_v7 }
 0x174   : > { %v503_v8 = vpop.trf.xlu2 }
 0x17a   : > { %1172 = vmatmul.msk.f32.gmra.mxu0 %vm435_vm1, %v502_v6 }
 0x17c   : > { %v504_v9 = vpop.trf.xlu2 }
 0x182   : > { %1173 = vmatmul.msk.f32.gmra.mxu0 %vm435_vm1, %v503_v8 }
 0x184   : > { %v505_v10 = vpop.trf.xlu2 }
 0x18a   : > { %1174 = vmatmul.msk.f32.gmra.mxu0 %vm435_vm1, %v504_v9 }
 0x18c   : > { %v506_v11 = vpop.trf.xlu2 }
 0x192   : > { %1175 = vmatmul.msk.f32.gmra.mxu0 %vm435_vm1, %v505_v10 }
 0x194   : > { %v507_v12 = vpop.trf.xlu2 }
 0x19a   : > { %1176 = vmatmul.msk.f32.gmra.mxu0 %vm435_vm1, %v506_v11  ;;  %v533_v13 = vpop.trf.xlu0 }
 0x19c   : > { %v508_v14 = vpop.trf.xlu2 }
 0x1a2   : > { %1177 = vmatmul.msk.f32.gmra.mxu0 %vm435_vm1, %v507_v12  ;;  %v534_v15 = vpop.trf.xlu0 }
 0x1a4   : > { %v509_v16 = vpop.trf.xlu2 }
 0x1a5   : > { %1179 = vmatmul.msk.f32.vlgmr.msra.gmra.mxu1 %vm435_vm1, %v509_v16 }
 0x1aa   : > { %1178 = vmatmul.msk.f32.gmra.mxu0 %vm435_vm1, %v508_v14  ;;  %v535_v17 = vpop.trf.xlu0 }
 0x1ac   : > { %v510_v18 = vpop.trf.xlu2 }
 0x1ad   : > { %1180 = vmatmul.msk.f32.gmra.mxu1 %vm435_vm1, %v510_v18 }
 0x1b2   : > { %v536_v19 = vpop.trf.xlu0 }
 0x1b4   : > { %v511_v20 = vpop.trf.xlu2 }
 0x1b5   : > { %1181 = vmatmul.msk.f32.gmra.mxu1 %vm435_vm1, %v511_v20 }
 0x1ba   : > { %v537_v21 = vpop.trf.xlu0 }
 0x1bc   : > { %v512_v22 = vpop.trf.xlu2 }
 0x1bd   : > { %1182 = vmatmul.msk.f32.gmra.mxu1 %vm435_vm1, %v512_v22 }
 0x1c2   : > { %v538_v23 = vpop.trf.xlu0 }
 0x1c3   : > { %1192 = vmatmul.msk.f32.vlgmr.msra.gmra.mxu2 %vm435_vm1, %v538_v23 }
 0x1c4   : > { %v513_v24 = vpop.trf.xlu2 }
 0x1c5   : > { %1183 = vmatmul.msk.f32.gmra.mxu1 %vm435_vm1, %v513_v24 }
 0x1ca   : > { %v539_v25 = vpop.trf.xlu0 }
 0x1cb   : > { %1193 = vmatmul.msk.f32.gmra.mxu2 %vm435_vm1, %v539_v25 }
 0x1cc   : > { %v514_v26 = vpop.trf.xlu2 }
 0x1cd   : > { %1184 = vmatmul.msk.f32.gmra.mxu1 %vm435_vm1, %v514_v26 }
 0x1d2   : > { %v540_v27 = vpop.trf.xlu0 }
 0x1d3   : > { %1194 = vmatmul.msk.f32.gmra.mxu2 %vm435_vm1, %v540_v27 }
 0x1d4   : > { %v515_v28 = vpop.trf.xlu2 }
 0x1d5   : > { %1185 = vmatmul.msk.f32.gmra.mxu1 %vm435_vm1, %v515_v28 }
 0x1da   : > { %v541_v29 = vpop.trf.xlu0 }
 0x1db   : > { %1195 = vmatmul.msk.f32.gmra.mxu2 %vm435_vm1, %v541_v29 }
 0x1dc   : > { %v516_v30 = vpop.trf.xlu2 }
 0x1dd   : > { %1186 = vmatmul.msk.f32.gmra.mxu1 %vm435_vm1, %v516_v30 }
 0x1e2   : > { %v542_v31 = vpop.trf.xlu0 }
 0x1e3   : > { %1196 = vmatmul.msk.f32.vlgmr.msra.gmra.mxu3 %vm435_vm1, %v542_v31 }
 0x1e5   : > { %1187 = vmatmul.msk.f32.gmra.mxu1 %vm435_vm1, %v533_v13 }
 0x1ea   : > { %v543_v32 = vpop.trf.xlu0 }
 0x1eb   : > { %1197 = vmatmul.msk.f32.gmra.mxu3 %vm435_vm1, %v543_v32 }
 0x1ed   : > { %1188 = vmatmul.msk.f32.gmra.mxu1 %vm435_vm1, %v534_v15 }
 0x1ef   : > { %v1807_v42 = vpop.f32.mrf.mxu0 }
 0x1f2   : > { %v544_v33 = vpop.trf.xlu0 }
 0x1f3   : > { %1198 = vmatmul.msk.f32.gmra.mxu3 %vm435_vm1, %v544_v33 }
 0x1f5   : > { %1189 = vmatmul.msk.f32.gmra.mxu1 %vm435_vm1, %v535_v17 }
 0x1f7   : > { %v1811_v44 = vpop.f32.mrf.mxu0 }
 0x1fa   : > { %v545_v34 = vpop.trf.xlu0 }
 0x1fb   : > { %1199 = vmatmul.msk.f32.gmra.mxu3 %vm435_vm1, %v545_v34 }
 0x1fd   : > { %1190 = vmatmul.msk.f32.gmra.mxu1 %vm435_vm1, %v536_v19 }
 0x1ff   : > { %v1815_v47 = vpop.f32.mrf.mxu0 }
 0x202   : > { %v546_v35 = vpop.trf.xlu0 }
 0x203   : > { %1200 = vmatmul.msk.f32.gmra.mxu3 %vm435_vm1, %v546_v35 }
 0x205   : > { %1191 = vmatmul.msk.f32.gmra.mxu1 %vm435_vm1, %v537_v21 }
 0x207   : > { %v1821_v53 = vpop.f32.mrf.mxu0 }
 0x20a   : > { %v547_v36 = vpop.trf.xlu0 }
 0x20b   : > { %1201 = vmatmul.msk.f32.gmra.mxu3 %vm435_vm1, %v547_v36 }
 0x20f   : > { %v1825_v55 = vpop.f32.mrf.mxu0 }
 0x210   : > { %v758_v5 = vmax.f32 %v1807_v42, %v1825_v55 }
 0x212   : > { %v548_v37 = vpop.trf.xlu0 }
 0x213   : > { %1202 = vmatmul.msk.f32.gmra.mxu3 %vm435_vm1, %v548_v37 }
 0x217   : > { %v1833_v59 = vpop.f32.mrf.mxu0 }
 0x218   : > { %v759_v3 = vmax.f32 %v1811_v44, %v1833_v59 }
 0x21f   : > { %v1841_v63 = vpop.f32.mrf.mxu0 }
 0x220   : > { %v760_v8 = vmax.f32 %v1815_v47, %v1841_v63 }
 0x222   : > { %v1799_v38 = vpop.f32.mrf.mxu1 }
 0x223   : > { %v762_v9 = vmax.f32 %v758_v5, %v1799_v38 }
 0x227   : > { %v1849_v4 = vpop.f32.mrf.mxu0 }
 0x228   : > { %v761_v10 = vmax.f32 %v1821_v53, %v1849_v4 }
 0x22a   : > { %v1801_v39 = vpop.f32.mrf.mxu1 }
 0x22b   : > { %v763_v11 = vmax.f32 %v759_v3, %v1801_v39 }
 0x232   : > { %v1803_v40 = vpop.f32.mrf.mxu1 }
 0x233   : > { %v764_v12 = vmax.f32 %v760_v8, %v1803_v40 }
 0x23a   : > { %v1805_v41 = vpop.f32.mrf.mxu1 }
 0x23b   : > { %v765_v13 = vmax.f32 %v761_v10, %v1805_v41 }
 0x242   : > { %v1809_v43 = vpop.f32.mrf.mxu1 }
 0x243   : > { %v766_v14 = vmax.f32 %v762_v9, %v1809_v43 }
 0x246   : > { %v1835_v60 = vpop.f32.mrf.mxu2 }
 0x24a   : > { %v1813_v45 = vpop.f32.mrf.mxu1 }
 0x24b   : > { %v767_v15 = vmax.f32 %v763_v11, %v1813_v45 }
 0x24e   : > { %v1843_v0 = vpop.f32.mrf.mxu2 }
 0x252   : > { %v1817_v51 = vpop.f32.mrf.mxu1 }
 0x253   : > { %v768_v17 = vmax.f32 %v764_v12, %v1817_v51 }
 0x256   : > { %v1855_v6 = vpop.f32.mrf.mxu2 }
 0x25a   : > { %v1819_v52 = vpop.f32.mrf.mxu1 }
 0x25b   : > { %v769_v18 = vmax.f32 %v765_v13, %v1819_v52 }
 0x25e   : > { %v1881_v26 = vpop.f32.mrf.mxu2 }
 0x262   : > { %v1823_v54 = vpop.f32.mrf.mxu1 }
 0x263   : > { %v770_v19 = vmax.f32 %v766_v14, %v1823_v54 }
 0x266   : > { %v1827_v56 = vpop.f32.mrf.mxu3 }
 0x26a   : > { %v1829_v57 = vpop.f32.mrf.mxu1 }
 0x26b   : > { %v771_v20 = vmax.f32 %v767_v15, %v1829_v57 }
 0x26d   : > { %v775_v25 = vmax.f32 %v771_v20, %v1835_v60 }
 0x26e   : > { %v1831_v58 = vpop.f32.mrf.mxu3 }
 0x26f   : > { %v779_v30 = vmax.f32 %v775_v25, %v1827_v56 }
 0x272   : > { %v1837_v61 = vpop.f32.mrf.mxu1 }
 0x273   : > { %v772_v21 = vmax.f32 %v768_v17, %v1837_v61 }
 0x275   : > { %v776_v27 = vmax.f32 %v772_v21, %v1843_v0 }
 0x276   : > { %v1839_v62 = vpop.f32.mrf.mxu3 }
 0x277   : > { %v780_v33 = vmax.f32 %v776_v27, %v1831_v58 }
 0x27a   : > { %v1847_v2 = vpop.f32.mrf.mxu1 }
 0x27b   : > { %v773_v22 = vmax.f32 %v769_v18, %v1847_v2 }
 0x27d   : > { %v777_v28 = vmax.f32 %v773_v22, %v1855_v6 }
 0x27e   : > { %v1845_v1 = vpop.f32.mrf.mxu3 }
 0x27f   : > { %v781_v34 = vmax.f32 %v777_v28, %v1839_v62 }
 0x282   : > { %v1869_v16 = vpop.f32.mrf.mxu1 }
 0x283   : > { %v774_v23 = vmax.f32 %v770_v19, %v1869_v16 }
 0x285   : > { %v778_v29 = vmax.f32 %v774_v23, %v1881_v26 }
 0x286   : > { %v1857_v7 = vpop.f32.mrf.mxu3 }
 0x287   : > { %v782_v31 = vmax.f32 %v778_v29, %v1845_v1  ;;  %v783_v32 = vmax.f32 %v779_v30, %v1857_v7 }
 0x289   : > { %v786_v5 = vmax.f32 %v782_v31, %v783_v32 }
 0x28e   : > { %v1878_v24 = vpop.f32.mrf.mxu3 }
 0x28f   : > { %v784_v36 = vmax.f32 %v780_v33, %v1878_v24 }
 0x296   : > { %v1891_v35 = vpop.f32.mrf.mxu3 }
 0x297   : > { %v785_v37 = vmax.f32 %v781_v34, %v1891_v35 }
 0x299   : > { %v787_v3 = vmax.f32 %v784_v36, %v785_v37 }
 0x29b   : > { %v788_v8 = vmax.f32 %v786_v5, %v787_v3 }
 0x29d   : > { %v789_v9 = vrot.slane %v788_v8, 4 }
 0x29f   : > { %v790_v10 = vmax.f32 %v788_v8, %v789_v9 }
 0x2a1   : > { %v791_v11 = vrot.slane %v790_v10, 2 }
 0x2a3   : > { %v792_v12 = vmax.f32 %v790_v10, %v791_v11 }
 0x2a5   : > { %v793_v13 = vrot.slane %v792_v12, 1 }
 0x2a7   : > { %v1895_v14 = vmax.f32 %v792_v12, %v793_v13 }
 0x2a9   : > { %v795_v15 = vsub.f32 %v1807_v42, %v1895_v14  ;;  %v796_v17 = vsub.f32 %v1811_v44, %v1895_v14  ;;  %v797_v18 = vsub.f32 %v1815_v47, %v1895_v14  ;;  %v798_v19 = vsub.f32 %v1821_v53, %v1895_v14 }
 0x2aa   : > { %v799_v22 = vsub.f32 %v1825_v55, %v1895_v14  ;;  %v800_v25 = vsub.f32 %v1833_v59, %v1895_v14  ;;  %v801_v44 = vsub.f32 %v1841_v63, %v1895_v14  ;;  %v802_v53 = vsub.f32 %v1849_v4, %v1895_v14 }
 0x2ab   : > { %v827_v20 = vmul.f32 1.442695, %v795_v15  ;;  %v829_v21 = vmul.f32 1.442695, %v796_v17  ;;  %v831_v23 = vmul.f32 1.442695, %v797_v18  ;;  %v803_v55 = vsub.f32 %v1799_v38, %v1895_v14 }
 0x2ac   : > { %v833_v42 = vmul.f32 1.442695, %v798_v19  ;;  %v835_v47 = vmul.f32 1.442695, %v799_v22  ;;  %v837_v27 = vmul.f32 1.442695, %v800_v25  ;;  %v810_v59 = vsub.f32 %v1819_v52, %v1895_v14 }
 0x2ad   : > { %1320 = vpow2.f32 %v827_v20  ;;  %v839_v30 = vmul.f32 1.442695, %v801_v44  ;;  %v804_v63 = vsub.f32 %v1801_v39, %v1895_v14  ;;  %v809_v32 = vsub.f32 %v1817_v51, %v1895_v14 }
 0x2ae   : > { %1322 = vpow2.f32 %v829_v21  ;;  %v841_v38 = vmul.f32 1.442695, %v802_v53  ;;  %v805_v33 = vsub.f32 %v1803_v40, %v1895_v14  ;;  %v843_v34 = vmul.f32 1.442695, %v803_v55 }
 0x2af   : > { %1324 = vpow2.f32 %v831_v23  ;;  %v808_v39 = vsub.f32 %v1813_v45, %v1895_v14  ;;  %v857_v37 = vmul.f32 1.442695, %v810_v59  ;;  %v806_v5 = vsub.f32 %v1805_v41, %v1895_v14 }
 0x2b0   : > { %1326 = vpow2.f32 %v833_v42  ;;  %v845_v3 = vmul.f32 1.442695, %v804_v63  ;;  %v807_v40 = vsub.f32 %v1809_v43, %v1895_v14  ;;  %v855_v9 = vmul.f32 1.442695, %v809_v32 }
 0x2b1   : > { %1328 = vpow2.f32 %v835_v47  ;;  %v847_v10 = vmul.f32 1.442695, %v805_v33  ;;  %v853_v12 = vmul.f32 1.442695, %v808_v39  ;;  %v849_v41 = vmul.f32 1.442695, %v806_v5 }
 0x2b2   : > { %1330 = vpow2.f32 %v837_v27  ;;  %v851_v17 = vmul.f32 1.442695, %v807_v40  ;;  %v811_v23 = vsub.f32 %v1823_v54, %v1895_v14  ;;  %v826_v44 = vsub.f32 %v1891_v35, %v1895_v14 }
 0x2b3   : > { %v1913_v28 = vpop.eup %1320  ;;  %1332 = vpow2.f32 %v839_v30  ;;  %v812_v53 = vsub.f32 %v1829_v57, %v1895_v14  ;;  %v825_v59 = vsub.f32 %v1878_v24, %v1895_v14  ;;  %v813_v54 = vsub.f32 %v1837_v61, %v1895_v14 }
 0x2b4   : > { %v1917_v29 = vpop.eup %1322  ;;  %1334 = vpow2.f32 %v841_v38  ;;  %v859_v63 = vmul.f32 1.442695, %v811_v23  ;;  %v824_v35 = vsub.f32 %v1857_v7, %v1895_v14  ;;  %v889_v38 = vmul.f32 1.442695, %v826_v44 }
 0x2b5   : > { %v891_v4 = vadd.f32 %v1917_v29, %v1913_v28  ;;  %v1925_v31 = vpop.eup %1324  ;;  %1336 = vpow2.f32 %v843_v34  ;;  %v814_v57 = vsub.f32 %v1847_v2, %v1895_v14  ;;  %v861_v33 = vmul.f32 1.442695, %v812_v53 }
 0x2b6   : > { %v1932_v36 = vpop.eup %1326  ;;  %1338 = vpow2.f32 %v857_v37  ;;  %v823_v24 = vsub.f32 %v1845_v1, %v1895_v14  ;;  %v815_v61 = vsub.f32 %v1869_v16, %v1895_v14  ;;  %v863_v39 = vmul.f32 1.442695, %v813_v54 }
 0x2b7   : > { %v892_v52 = vadd.f32 %v1925_v31, %v891_v4  ;;  %v1939_v8 = vpop.eup %1328  ;;  %1340 = vpow2.f32 %v845_v3  ;;  %v822_v7 = vsub.f32 %v1839_v62, %v1895_v14  ;;  %v885_v5 = vmul.f32 1.442695, %v824_v35 }
 0x2b8   : > { %v1944_v45 = vpop.eup %1330  ;;  %1342 = vpow2.f32 %v855_v9  ;;  %v816_v2 = vsub.f32 %v1835_v60, %v1895_v14  ;;  %v865_v3 = vmul.f32 1.442695, %v814_v57  ;;  %v821_v1 = vsub.f32 %v1831_v58, %v1895_v14 }
 0x2b9   : > { %v893_v51 = vadd.f32 %v1932_v36, %v892_v52  ;;  %v1947_v15 = vpop.eup %1332  ;;  %1344 = vpow2.f32 %v847_v10  ;;  %v887_v52 = vmul.f32 1.442695, %v825_v59  ;;  %v883_v16 = vmul.f32 1.442695, %v823_v24  ;;  %v929_v24 = vld [vmem:[#allocation3 + $0x18] sm:$0xff] }
 0x2ba   : > { %v1950_v18 = vpop.eup %1334  ;;  %1346 = vpow2.f32 %v853_v12  ;;  %v817_v40 = vsub.f32 %v1843_v0, %v1895_v14  ;;  %v867_v9 = vmul.f32 1.442695, %v815_v61  ;;  %v820_v10 = vsub.f32 %v1827_v56, %v1895_v14  ;;  %v931_v61 = vld [vmem:[#allocation3 + $0x20] sm:$0xff] }
 0x2bb   : > { %v894_v11 = vadd.f32 %v1939_v8, %v893_v51  ;;  %v1337_v19 = vpop.eup %1336  ;;  %1348 = vpow2.f32 %v849_v41  ;;  %v881_v60 = vmul.f32 1.442695, %v822_v7  ;;  %v818_v12 = vsub.f32 %v1855_v6, %v1895_v14  ;;  %v935_v7 = vld [vmem:[#allocation3 + $0x38] sm:$0xff] }
 0x2bc   : > { %v1339_v21 = vpop.eup %1338  ;;  %1350 = vpow2.f32 %v851_v17  ;;  %v869_v58 = vmul.f32 1.442695, %v816_v2  ;;  %v819_v0 = vsub.f32 %v1881_v26, %v1895_v14  ;;  %v879_v17 = vmul.f32 1.442695, %v821_v1 }
 0x2bd   : > { %v895_v13 = vadd.f32 %v1944_v45, %v894_v11  ;;  %v1341_v22 = vpop.eup %1340  ;;  %936 = vmatpush.msrb.mxu2 %v1339_v21  ;;  %1352 = vpow2.f32 %v859_v63  ;;  %v871_v56 = vmul.f32 1.442695, %v817_v40 }
 0x2be   : > { %v1343_v42 = vpop.eup %1342  ;;  %1354 = vpow2.f32 %v889_v38  ;;  %v875_v23 = vmul.f32 1.442695, %v819_v0 }
 0x2bf   : > { %v896_v43 = vadd.f32 %v1947_v15, %v895_v13  ;;  %v1345_v47 = vpop.eup %1344  ;;  %937 = vmatpush.msrb.mxu2 %v1343_v42  ;;  %1356 = vpow2.f32 %v861_v33 }
 0x2c0   : > { %v1347_v55 = vpop.eup %1346  ;;  %1358 = vpow2.f32 %v887_v52 }
 0x2c1   : > { %v897_v20 = vadd.f32 %v1950_v18, %v896_v43  ;;  %v1349_v30 = vpop.eup %1348  ;;  %938 = vmatpush.msrb.mxu2 %v1347_v55  ;;  %1360 = vpow2.f32 %v863_v39  ;;  %v934_v39 = vld [vmem:[#allocation3 + $0x30] sm:$0xff] }
 0x2c2   : > { %v1351_v32 = vpop.eup %1350  ;;  %1362 = vpow2.f32 %v885_v5 }
 0x2c3   : > { %v898_v25 = vadd.f32 %v1337_v19, %v897_v20  ;;  %939 = vmatpush.msrb.mxu2 %v1351_v32  ;;  %v1981_v11 = vpop.eup %1352  ;;  %1364 = vpow2.f32 %v865_v3 }
 0x2c4   : > { %v1985_v13 = vpop.eup %1354  ;;  %1366 = vpow2.f32 %v883_v16 }
 0x2c5   : > { %v899_v27 = vadd.f32 %v1341_v22, %v898_v25  ;;  %940 = vmatpush.msrb.mxu2 %v1349_v30  ;;  %v1989_v43 = vpop.eup %1356  ;;  %1368 = vpow2.f32 %v867_v9  ;;  %965 = vmatpush.msrb.mxu3 %v1985_v13 }
 0x2c6   : > { %v1359_v6 = vpop.eup %1358  ;;  %1370 = vpow2.f32 %v881_v60 }
 0x2c7   : > { %v900_v4 = vadd.f32 %v1345_v47, %v899_v27  ;;  %941 = vmatpush.msrb.mxu2 %v1345_v47  ;;  %1372 = vpow2.f32 %v869_v58  ;;  %966 = vmatpush.msrb.mxu3 %v1359_v6 }
 0x2c8   : > { %1374 = vpow2.f32 %v879_v17 }
 0x2c9   : > { %v901_v34 = vadd.f32 %v1349_v30, %v900_v4  ;;  %942 = vmatpush.msrb.mxu2 %v1341_v22  ;;  %v873_v22 = vmul.f32 1.442695, %v818_v12  ;;  %1376 = vpow2.f32 %v871_v56 }
 0x2cb   : > { %v902_v37 = vadd.f32 %v1351_v32, %v901_v34  ;;  %943 = vmatpush.msrb.mxu2 %v1337_v19  ;;  %v1361_v19 = vpop.eup %1360 }
 0x2cc   : > { %v1363_v14 = vpop.eup %1362 }
 0x2cd   : > { %v903_v51 = vadd.f32 %v1347_v55, %v902_v37  ;;  %944 = vmatpush.msrb.mxu2 %v1950_v18  ;;  %v1365_v25 = vpop.eup %1364  ;;  %967 = vmatpush.msrb.mxu3 %v1363_v14  ;;  %v933_v37 = vld [vmem:[#allocation3 + $0x8] sm:$0xff] }
 0x2ce   : > { %v1367_v18 = vpop.eup %1366 }
 0x2cf   : > { %v904_v62 = vadd.f32 %v1343_v42, %v903_v51  ;;  %945 = vmatpush.msrb.mxu2 %v1947_v15  ;;  %v1369_v44 = vpop.eup %1368  ;;  %968 = vmatpush.msrb.mxu3 %v1367_v18 }
 0x2d0   : > { %v1371_v53 = vpop.eup %1370 }
 0x2d1   : > { %v905_v41 = vadd.f32 %v1339_v21, %v904_v62  ;;  %v877_v21 = vmul.f32 1.442695, %v820_v10  ;;  %946 = vmatpush.msrb.mxu2 %v1944_v45  ;;  %v1373_v15 = vpop.eup %1372  ;;  %969 = vmatpush.msrb.mxu3 %v1371_v53 }
 0x2d2   : > { %v1375_v55 = vpop.eup %1374 }
 0x2d3   : > { %v906_v20 = vadd.f32 %v1981_v11, %v905_v41  ;;  %1378 = vpow2.f32 %v877_v21  ;;  %947 = vmatpush.msrb.mxu2 %v1939_v8  ;;  %v1377_v59 = vpop.eup %1376  ;;  %970 = vmatpush.msrb.mxu3 %v1375_v55  ;;  %v928_v8 = vld [vmem:[#allocation3] sm:$0xff] }
 0x2d4   : > { %1380 = vpow2.f32 %v873_v22 }
 0x2d5   : > { %v907_v26 = vadd.f32 %v1989_v43, %v906_v20  ;;  %1382 = vpow2.f32 %v875_v23  ;;  %948 = vmatpush.msrb.mxu2 %v1932_v36 }
 0x2d7   : > { %v908_v42 = vadd.f32 %v1361_v19, %v907_v26  ;;  %949 = vmatpush.msrb.mxu2 %v1925_v31  ;;  %v930_v31 = vld [vmem:[#allocation3 + $0x10] sm:$0xff] }
 0x2d9   : > { %v909_v47 = vadd.f32 %v1365_v25, %v908_v42  ;;  %v1379_v45 = vpop.eup %1378  ;;  %950 = vmatpush.msrb.mxu2 %v1917_v29 }
 0x2da   : > { %v1381_v54 = vpop.eup %1380  ;;  %971 = vmatpush.msrb.mxu3 %v1379_v45 }
 0x2db   : > { %v910_v27 = vadd.f32 %v1369_v44, %v909_v47  ;;  %v1383_v4 = vpop.eup %1382  ;;  %951 = vmatpush.msrb.mxu2 %v1913_v28  ;;  %v932_v28 = vld [vmem:[#allocation3 + $0x28] sm:$0xff] }
 0x2dc   : > { %972 = vmatpush.msrb.mxu3 %v1383_v4  ;;  %952 = vmatmul.f32.vlgmr.msrb.gmra.mxu2 %v928_v8 }
 0x2dd   : > { %v911_v30 = vadd.f32 %v1373_v15, %v910_v27 }
 0x2de   : > { %973 = vmatpush.msrb.mxu3 %v1381_v54 }
 0x2df   : > { %v912_v63 = vadd.f32 %v1377_v59, %v911_v30 }
 0x2e0   : > { %974 = vmatpush.msrb.mxu3 %v1377_v59 }
 0x2e1   : > { %v913_v32 = vadd.f32 %v1381_v54, %v912_v63 }
 0x2e2   : > { %975 = vmatpush.msrb.mxu3 %v1373_v15 }
 0x2e3   : > { %v914_v36 = vadd.f32 %v1383_v4, %v913_v32 }
 0x2e4   : > { %976 = vmatpush.msrb.mxu3 %v1369_v44  ;;  %955 = vmatmul.f32.gmra.mxu2 %v930_v31 }
 0x2e5   : > { %v915_v35 = vadd.f32 %v1379_v45, %v914_v36 }
 0x2e6   : > { %977 = vmatpush.msrb.mxu3 %v1365_v25 }
 0x2e7   : > { %v916_v38 = vadd.f32 %v1375_v55, %v915_v35 }
 0x2e8   : > { %978 = vmatpush.msrb.mxu3 %v1361_v19 }
 0x2e9   : > { %v917_v57 = vadd.f32 %v1371_v53, %v916_v38 }
 0x2ea   : > { %979 = vmatpush.msrb.mxu3 %v1989_v43 }
 0x2eb   : > { %v918_v33 = vadd.f32 %v1367_v18, %v917_v57 }
 0x2ec   : > { %980 = vmatpush.msrb.mxu3 %v1981_v11  ;;  %958 = vmatmul.f32.gmra.mxu2 %v932_v28 }
 0x2ed   : > { %v919_v29 = vadd.f32 %v1363_v14, %v918_v33  ;;  %981 = vmatmul.f32.vlgmr.msrb.gmra.mxu3 %v929_v24 }
 0x2ef   : > { %v920_v34 = vadd.f32 %v1359_v6, %v919_v29 }
 0x2f1   : > { %v921_v52 = vadd.f32 %v1985_v13, %v920_v34 }
 0x2f3   : > { %v922_v5 = vrot.slane %v921_v52, 4 }
 0x2f4   : > { %961 = vmatmul.f32.gmra.mxu2 %v934_v39 }
 0x2f5   : > { %984 = vmatmul.f32.gmra.mxu3 %v931_v61  ;;  %v923_v2 = vadd.f32 %v922_v5, %v921_v52 }
 0x2f7   : > { %v924_v3 = vrot.slane %v923_v2, 2 }
 0x2f9   : > { %v925_v51 = vadd.f32 %v924_v3, %v923_v2 }
 0x2fb   : > { %v926_v1 = vrot.slane %v925_v51, 1 }
 0x2fd   : > { %987 = vmatmul.f32.gmra.mxu3 %v933_v37  ;;  %v927_v16 = vadd.f32 %v926_v1, %v925_v51 }
 0x2ff   : > { %1384 = vrcp.f32 %v927_v16  ;;  %v1005_v12 = vand.u32 2147483648, %v927_v16  ;;  %vm999_vm3 = vweird.f32 %v927_v16  ;;  %v1003_v58 = vand.u32 2147483647, %v927_v16 }
 0x301   : > { %v1006_v0 = vor.u32 1.1754944e-38, %v1005_v12  ;;  %vm1004_vm5 = vcmp.eq.f32.partialorder %v1003_v58, 8.507059e+37 }
 0x305   : > { %990 = vmatmul.f32.gmra.mxu3 %v935_v7  ;;  %v1385_v40 = vpop.eup %1384 }
 0x306   : > { %v995_v9 = vmul.f32 %v1385_v40, %v927_v16  ;;  %vm1000_vm2 = vweird.f32 %v1385_v40 }
 0x307   : > { %vm1001_vm4 = vmor %vm999_vm3, %vm1000_vm2 }
 0x308   : > { %v996_v62 = vsub.f32 1.0, %v995_v9 }
 0x30a   : > { %v997_v10 = vmul.f32 %v1385_v40, %v996_v62 }
 0x30c   : > { %v998_v11 = vadd.f32 %v1385_v40, %v997_v10 }
 0x30e   : > { %v1002_v41 = vsel %vm1001_vm4, %v1385_v40, %v998_v11 }
 0x30f   : > { %v1007_v43 = vsel %vm1004_vm5, %v1006_v0, %v1002_v41 }
 0x35f   : > { %v953_v60 = vpop.f32.mrf.mxu2 }
 0x367   : > { %v956_v56 = vpop.f32.mrf.mxu2 }
 0x36f   : > { %v959_v26 = vpop.f32.mrf.mxu2 }
 0x370   : > { %v982_v13 = vpop.f32.mrf.mxu3 }
 0x371   : > { %v983_v17 = vadd.f32 %v982_v13, %v953_v60 }
 0x373   : > { %v1008_v20 = vmul.f32 %v1007_v43, %v983_v17 }
 0x375   : > { %v1012_v6 = vadd.f32 %v1008_v20, %v1753_v50 }
 0x377   : > { %1016 = vst [vmem:[%s1720_s7] sm:$0xff] %v1012_v6  ;;  %v962_v18 = vpop.f32.mrf.mxu2 }
 0x378   : > { %v985_v21 = vpop.f32.mrf.mxu3 }
 0x379   : > { %v986_v19 = vadd.f32 %v985_v21, %v956_v56 }
 0x37b   : > { %v1009_v22 = vmul.f32 %v1007_v43, %v986_v19 }
 0x37d   : > { %v1013_v14 = vadd.f32 %v1009_v22, %v1748_v49 }
 0x37f   : > { %1017 = vst [vmem:[%s1720_s7 + $0x8] sm:$0xff] %v1013_v14 }
 0x380   : > { %v988_v23 = vpop.f32.mrf.mxu3 }
 0x381   : > { %v989_v25 = vadd.f32 %v988_v23, %v959_v26 }
 0x383   : > { %v1010_v42 = vmul.f32 %v1007_v43, %v989_v25 }
 0x385   : > { %v1014_v50 = vadd.f32 %v1010_v42, %v1743_v48 }
 0x387   : > { %1018 = vst [vmem:[%s1720_s7 + $0x10] sm:$0xff] %v1014_v50 }
 0x388   : > { %v991_v44 = vpop.f32.mrf.mxu3 }
 0x389   : > { %v992_v49 = vadd.f32 %v991_v44, %v962_v18 }
 0x38b   : > { %v1011_v47 = vmul.f32 %v1007_v43, %v992_v49 }
 0x38d   : > { %v1015_v53 = vadd.f32 %v1011_v47, %v1740_v46 }
 0x38f   : > { %1019 = vst [vmem:[%s1720_s7 + $0x18] sm:$0xff] %v1015_v53 }
 0x390   : > { %1443 = shalt.err (!%p1440_p0)
}
 0x391   : > { %s1521_s11 = smov 128   ;;  %s1522_s6 = smov 256  }
 0x392   : > { %s1523_s7 = smov 8  }
 0x393   : > { %1231 = dma.vmem_to_hbm [thread:$0]  (%p1614_p9), %s1037_s25, 512, %s1039_s19, %s1021_s18, %s1521_s11, %s1522_s6, %s1523_s7  }
 0x394 PF: > { %p1242_p1 = scmp.ge.s32.totalorder %s1514_s22, 2  ;;  %s1053_s26 = sand.u32 1, %s1486_s15  }
 0x395   : > { %s1054_s12 = scalar_lea.sflag [#allocation6], %s1053_s26 }
 0x396   : > { %p1238_p2 = pnand %p1242_p1, %p1620_p12 }
 0x398   : > { %p1239_p4 = pneg %p1238_p2 }
 0x39a   : > { %1481 = dma.done.wait (%p1239_p4), %s1054_s12, 512  }
 0x39b   : > { %1483 = vsyncadd (%p1239_p4), %s1054_s12, 4294966784  ;;  %s20_s22 = sadd.s32 1, %s1514_s22   ;;  %s2074_s13 = sld [smem:[#allocation10_spill]] }
 0x39c   : > { %p17_p3 = scmp.ge.s32.totalorder %s20_s22, 6   ;;  %s2075_s17 = sld [smem:[#allocation13_spill]] }
 0x39d   : > { %s2076_s5 = sld [smem:[#allocation11_spill]]  ;;  %s2078_s15 = smov %s1490_s16 }
 0x39e   : > { %s2077_s27 = sld [smem:[#allocation12_spill]]  ;;  %s2080_s18 = smov %s1506_s20 }
 0x39f   : > { %s2081_s19 = smov %s1510_s21 }
 0x3a0   :  { %19 = sbr.rel (!%p17_p3) target bundleno = 7 (0x7), region = 88 }
 0x3a1   : > { %s2079_s16 = smov %s2074_s13 }
 0x3a3   : > { %s2082_s20 = smov %s2076_s5 }
 0x3a4   : > { %s2083_s21 = smov %s2077_s27 }
 0x3a5   :  { %1060 = vsyncpa [#allocation5], 1 }
 0x3a6   :  { %1062 = vsyncpa [#allocation5 + $0x1], 1 }
 0x3a7   :  { %1063 = vsyncpa [#allocation6], 1 }
 0x3a8   :  { %1065 = vsyncpa [#allocation6 + $0x1], 1 }

</bundles_post_ra>
